<compile_context>
chip_gen: v7x
topology: tpu7x:2x2x1
jax: 0.10.0
libtpu: 0.0.40
codegen_flags: <defaults>
</compile_context>

<pallas_src>
import functools
import math

import jax
import jax.numpy as jnp
from jax.experimental import pallas as pl
from jax.experimental.pallas import tpu as pltpu


def _qkv_proj_kernel(x_ref, w_ref, b_ref, q_ref, k_ref, v_ref):
    """Fused Q/K/V 1x1 conv for one batch element.

    x_ref: (1, C, L) bf16   w_ref: (3C, C) bf16   b_ref: (3C, 1) f32
    q_ref / k_ref / v_ref: (1, C, L) blocks of the (B, C, L) conv outputs.
    """
    x = x_ref[0]                                                   # (C, L) bf16
    acc = jnp.dot(w_ref[...], x, preferred_element_type=jnp.float32)  # (3C, L) f32
    acc = acc + b_ref[...]                                         # bias in f32
    C = q_ref.shape[1]
    q_ref[0] = acc[0 * C:1 * C].astype(q_ref.dtype)
    k_ref[0] = acc[1 * C:2 * C].astype(k_ref.dtype)
    v_ref[0] = acc[2 * C:3 * C].astype(v_ref.dtype)


def _attention_kernel(k_ref, v_ref, q_ref, o_ref, *, scale):
    """att = softmax_dim0(keys @ values * scale); out = att @ queries.

    k_ref: (B, tl, C)  v_ref: (B, C, L)  q_ref: (B, L, C)  o_ref: (B, tl, C)

    NOTE: the legacy nn.Softmax() (dim=None on a 3-D tensor) normalizes over
    dim 0 == batch.  The FULL batch must stay inside every block for this to
    be correct — do NOT turn B into a grid axis.
    """
    s = jnp.einsum('blc,bcm->blm', k_ref[...], v_ref[...],
                   preferred_element_type=jnp.float32) * scale      # f32 scores
    s = s - jnp.max(s, axis=0, keepdims=True)
    e = jnp.exp(s)
    att = e / jnp.sum(e, axis=0, keepdims=True)    # exact divide (parity w/ torch)
    # Dropout(0.1): identity in eval mode.
    o_ref[...] = jnp.einsum('blm,bmc->blc', att.astype(q_ref.dtype), q_ref[...],
                            preferred_element_type=jnp.float32).astype(o_ref.dtype)


def _pick_query_tile(L):
    """Largest multiple-of-8 divisor of L that yields >= 2 grid steps (keeps
    both v7x TensorCores busy on the 'parallel' axis); falls back to full L
    (always a legal block dim)."""
    best = None
    t = 8
    while 2 * t <= L:
        if L % t == 0:
            best = t
        t += 8
    return best if best is not None else L


def self_attention_forward(features, image_features, num_heads, params):
    B = image_features.shape[0]
    img_channels = image_features.shape[1]
    h, w = image_features.shape[2], image_features.shape[3]
    L = h * w
    C = img_channels // num_heads            # hidden_size
    assert features.shape == (B, C, h, w)
    out_dtype = features.dtype
    cdtype = jnp.bfloat16                    # MXU operand dtype (f32 accumulation)
    c_isz = jnp.dtype(cdtype).itemsize
    o_isz = jnp.dtype(out_dtype).itemsize

    # Stack Q/K/V weights & biases: one fused (3C, C) MXU matmul instead of three.
    w_qkv = jnp.concatenate([params['wq'], params['wk'], params['wv']],
                            axis=0).astype(cdtype)                          # (3C, C)
    b_qkv = jnp.concatenate([params['bq'], params['bk'], params['bv']],
                            axis=0).reshape(3 * C, 1).astype(jnp.float32)   # (3C, 1)

    # (B, C, h, w) -> (B, C, L): pure flat merge of the spatial dims (no transpose).
    x = features.reshape(B, C, L).astype(cdtype)

    # --- kernel 1: fused QKV 1x1 conv, grid over batch ("parallel" -> 2 TCs) ----
    q_conv, k_conv, v_conv = pl.pallas_call(
        _qkv_proj_kernel,
        out_shape=tuple(jax.ShapeDtypeStruct((B, C, L), cdtype) for _ in range(3)),
        grid=(B,),
        in_specs=[
            pl.BlockSpec((1, C, L), lambda b: (b, 0, 0)),
            pl.BlockSpec((3 * C, C), lambda b: (0, 0)),
            pl.BlockSpec((3 * C, 1), lambda b: (0, 0)),
        ],
        out_specs=tuple(pl.BlockSpec((1, C, L), lambda b: (b, 0, 0))
                        for _ in range(3)),
        compiler_params=pltpu.CompilerParams(
            dimension_semantics=("parallel",),
            vmem_limit_bytes=32 * 1024 * 1024),
        cost_estimate=pl.CostEstimate(
            flops=2 * (3 * C) * C * B * L,
            transcendentals=0,
            bytes_accessed=c_isz * (B * C * L + 3 * C * C + 3 * B * C * L)
                           + 4 * 3 * C),
    )(x, w_qkv, b_qkv)

    # torch .view() reinterpretations: flat row-major reshapes (layout glue only,
    # a few KiB each; NOT transposes).
    keys = k_conv.reshape(B, L, C)
    queries = q_conv.reshape(B, L, C)
    values = v_conv                  # .view(B,L,C).view(B,C,L) round trip == conv output

    # --- kernel 2: attention, grid over query-row tiles ("parallel") -----------
    tl = _pick_query_tile(L)
    grid = (L // tl,)

    att_out = pl.pallas_call(
        functools.partial(_attention_kernel, scale=1.0 / math.sqrt(C)),
        out_shape=jax.ShapeDtypeStruct((B, L, C), out_dtype),
        grid=grid,
        in_specs=[
            pl.BlockSpec((B, tl, C), lambda li: (0, li, 0)),   # keys (tiled over rows)
            pl.BlockSpec((B, C, L), lambda li: (0, 0, 0)),     # values (resident)
            pl.BlockSpec((B, L, C), lambda li: (0, 0, 0)),     # queries (resident)
        ],
        out_specs=pl.BlockSpec((B, tl, C), lambda li: (0, li, 0)),
        compiler_params=pltpu.CompilerParams(
            dimension_semantics=("parallel",),
            vmem_limit_bytes=32 * 1024 * 1024),
        cost_estimate=pl.CostEstimate(
            flops=4 * B * L * L * C,
            transcendentals=B * L * L,
            # keys/values/queries fetched once each (constant index maps stay
            # resident across the grid) + f32 output write-back.
            bytes_accessed=c_isz * 3 * B * L * C + o_isz * B * L * C),
    )(keys, values, queries)

    # Final torch .view: contiguous (B, L, C) reinterpreted as (B, C, h, w).
    return att_out.reshape(B, C, h, w)


if __name__ == "__main__":
    # opt.cnn_type == 'resnet18' -> image_channel = 512; opt.val_num_heads = 8
    num_heads = 8
    image_channel = 512
    hidden = image_channel // num_heads      # 64
    B, H, W = 2, 4, 4

    key = jax.random.PRNGKey(0)
    ks = jax.random.split(key, 8)
    features = jax.random.normal(ks[0], (B, hidden, H, W), jnp.float32)
    image_features = jax.random.normal(ks[1], (B, image_channel, H, W), jnp.float32)

    # Deterministic synthetic parameters (Conv2d 1x1 weights squeezed to (C, C)).
    params = {
        'wq': jax.random.normal(ks[2], (hidden, hidden), jnp.float32) * 0.05,
        'wk': jax.random.normal(ks[3], (hidden, hidden), jnp.float32) * 0.05,
        'wv': jax.random.normal(ks[4], (hidden, hidden), jnp.float32) * 0.05,
        'bq': jax.random.normal(ks[5], (hidden,), jnp.float32) * 0.05,
        'bk': jax.random.normal(ks[6], (hidden,), jnp.float32) * 0.05,
        'bv': jax.random.normal(ks[7], (hidden,), jnp.float32) * 0.05,
    }

    fwd = jax.jit(self_attention_forward, static_argnums=(2,))
    out = jax.block_until_ready(fwd(features, image_features, num_heads, params))
    assert out.shape == (B, hidden, H, W)

    L = H * W

    def reference(feat, cast_bf16):
        """Pure-JAX reference of the exact PyTorch semantics.  With
        cast_bf16=True it applies the same bf16-operand / f32-accumulation
        policy as the kernels (tight check); with False it is the full-f32
        PyTorch math (loose check for the deliberate bf16 precision change)."""
        x = feat.reshape(B, hidden, L)
        if cast_bf16:
            xm = x.astype(jnp.bfloat16)
            wq, wk, wv = (params[n].astype(jnp.bfloat16) for n in ('wq', 'wk', 'wv'))
        else:
            xm, wq, wk, wv = x, params['wq'], params['wk'], params['wv']

        def proj(wm, b):
            y = jnp.einsum('oc,bcl->bol', wm, xm,
                           preferred_element_type=jnp.float32) + b[None, :, None]
            return y.astype(jnp.bfloat16) if cast_bf16 else y

        q = proj(wq, params['bq'])
        k = proj(wk, params['bk'])
        v = proj(wv, params['bv'])
        keys = k.reshape(B, L, hidden)
        queries = q.reshape(B, L, hidden)
        values = v
        s = jnp.einsum('blc,bcm->blm', keys, values,
                       preferred_element_type=jnp.float32) / math.sqrt(hidden)
        s = s - jnp.max(s, axis=0, keepdims=True)
        e = jnp.exp(s)
        att = e / jnp.sum(e, axis=0, keepdims=True)   # legacy nn.Softmax() -> dim=0
        if cast_bf16:
            att = att.astype(jnp.bfloat16)
        o = jnp.einsum('blm,bmc->blc', att, queries,
                       preferred_element_type=jnp.float32)
        return o.reshape(B, hidden, H, W)

    ref_policy = reference(features, cast_bf16=True)    # same precision policy -> tight
    ref_f32 = reference(features, cast_bf16=False)      # exact f32 PyTorch math -> loose
    assert jnp.allclose(out, ref_policy, atol=2e-3, rtol=2e-3), \
        float(jnp.max(jnp.abs(out - ref_policy)))
    assert jnp.allclose(out, ref_f32, atol=3e-2, rtol=3e-2), \
        float(jnp.max(jnp.abs(out - ref_f32)))
    print("KERNEL_OK")
</pallas_src>

<mosaic_0001>
module attributes {stable_mosaic.version = 11 : i64} {
  func.func @_qkv_proj_kernel(%arg0: i32, %arg1: memref<1x64x16xbf16, #tpu.memory_space<vmem>>, %arg2: memref<192x64xbf16, #tpu.memory_space<vmem>>, %arg3: memref<192x1xf32, #tpu.memory_space<vmem>>, %arg4: memref<1x64x16xbf16, #tpu.memory_space<vmem>>, %arg5: memref<1x64x16xbf16, #tpu.memory_space<vmem>>, %arg6: memref<1x64x16xbf16, #tpu.memory_space<vmem>>) attributes {dimension_semantics = [#tpu.dimension_semantics<parallel>], iteration_bounds = array<i64: 2>, scalar_prefetch = 0 : i64, scratch_operands = 0 : i64, tpu.core_type = #tpu.core_type<tc>, window_params = [{transform_indices = @transform_0, window_bounds = array<i64: 1, 64, 16>}, {pipeline_mode = #tpu.pipeline_mode<synchronous>, transform_indices = @transform_1, window_bounds = array<i64: 192, 64>}, {pipeline_mode = #tpu.pipeline_mode<synchronous>, transform_indices = @transform_2, window_bounds = array<i64: 192, 1>}, {transform_indices = @transform_3, window_bounds = array<i64: 1, 64, 16>}, {transform_indices = @transform_4, window_bounds = array<i64: 1, 64, 16>}, {transform_indices = @transform_5, window_bounds = array<i64: 1, 64, 16>}]} {
    %c0 = arith.constant 0 : index
    %c0_0 = arith.constant 0 : index
    %c0_1 = arith.constant 0 : index
    %0 = vector.load %arg1[%c0, %c0_0, %c0_1] : memref<1x64x16xbf16, #tpu.memory_space<vmem>>, vector<1x64x16xbf16>
    %1 = vector.shape_cast %0 : vector<1x64x16xbf16> to vector<64x16xbf16>
    %c0_2 = arith.constant 0 : index
    %c0_3 = arith.constant 0 : index
    %2 = vector.load %arg2[%c0_2, %c0_3] : memref<192x64xbf16, #tpu.memory_space<vmem>>, vector<192x64xbf16>
    %cst = arith.constant dense<0.000000e+00> : vector<192x16xf32>
    %3 = tpu.matmul %2, %1, %cst {dimension_numbers = #tpu.dot_dimension_numbers<[1], [0], [0], [1], [0, 0, 1, 1], [], []>} : vector<192x64xbf16>, vector<64x16xbf16>, vector<192x16xf32> -> vector<192x16xf32>
    %c0_4 = arith.constant 0 : index
    %c0_5 = arith.constant 0 : index
    %4 = vector.load %arg3[%c0_4, %c0_5] : memref<192x1xf32, #tpu.memory_space<vmem>>, vector<192x1xf32>
    %5 = vector.broadcast %4 : vector<192x1xf32> to vector<192x16xf32>
    %6 = arith.addf %3, %5 : vector<192x16xf32>
    %7 = vector.extract_strided_slice %6 {offsets = [0, 0], sizes = [64, 16], strides = [1, 1]} : vector<192x16xf32> to vector<64x16xf32>
    %8 = arith.truncf %7 : vector<64x16xf32> to vector<64x16xbf16>
    %c0_6 = arith.constant 0 : index
    %c0_7 = arith.constant 0 : index
    %c0_8 = arith.constant 0 : index
    %9 = vector.load %arg4[%c0_6, %c0_7, %c0_8] : memref<1x64x16xbf16, #tpu.memory_space<vmem>>, vector<1x64x16xbf16>
    %10 = vector.shape_cast %9 : vector<1x64x16xbf16> to vector<64x16xbf16>
    %11 = vector.shape_cast %8 : vector<64x16xbf16> to vector<1x64x16xbf16>
    tpu.vector_store %arg4[%c0_6, %c0_7, %c0_8], %11 {strides = array<i32>} : memref<1x64x16xbf16, #tpu.memory_space<vmem>>, vector<1x64x16xbf16>,
    %12 = vector.extract_strided_slice %6 {offsets = [64, 0], sizes = [64, 16], strides = [1, 1]} : vector<192x16xf32> to vector<64x16xf32>
    %13 = arith.truncf %12 : vector<64x16xf32> to vector<64x16xbf16>
    %c0_9 = arith.constant 0 : index
    %c0_10 = arith.constant 0 : index
    %c0_11 = arith.constant 0 : index
    %14 = vector.load %arg5[%c0_9, %c0_10, %c0_11] : memref<1x64x16xbf16, #tpu.memory_space<vmem>>, vector<1x64x16xbf16>
    %15 = vector.shape_cast %14 : vector<1x64x16xbf16> to vector<64x16xbf16>
    %16 = vector.shape_cast %13 : vector<64x16xbf16> to vector<1x64x16xbf16>
    tpu.vector_store %arg5[%c0_9, %c0_10, %c0_11], %16 {strides = array<i32>} : memref<1x64x16xbf16, #tpu.memory_space<vmem>>, vector<1x64x16xbf16>,
    %17 = vector.extract_strided_slice %6 {offsets = [128, 0], sizes = [64, 16], strides = [1, 1]} : vector<192x16xf32> to vector<64x16xf32>
    %18 = arith.truncf %17 : vector<64x16xf32> to vector<64x16xbf16>
    %c0_12 = arith.constant 0 : index
    %c0_13 = arith.constant 0 : index
    %c0_14 = arith.constant 0 : index
    %19 = vector.load %arg6[%c0_12, %c0_13, %c0_14] : memref<1x64x16xbf16, #tpu.memory_space<vmem>>, vector<1x64x16xbf16>
    %20 = vector.shape_cast %19 : vector<1x64x16xbf16> to vector<64x16xbf16>
    %21 = vector.shape_cast %18 : vector<64x16xbf16> to vector<1x64x16xbf16>
    tpu.vector_store %arg6[%c0_12, %c0_13, %c0_14], %21 {strides = array<i32>} : memref<1x64x16xbf16, #tpu.memory_space<vmem>>, vector<1x64x16xbf16>,
    return
  }
  func.func @transform_0(%arg0: i32) -> (i32, i32, i32) {
    %c0_i32 = arith.constant 0 : i32
    %c0_i32_0 = arith.constant 0 : i32
    %c0_i32_1 = arith.constant 0 : i32
    return %arg0, %c0_i32, %c0_i32_0 : i32, i32, i32
  }
  func.func @transform_1(%arg0: i32) -> (i32, i32) {
    %c0_i32 = arith.constant 0 : i32
    %c0_i32_0 = arith.constant 0 : i32
    %c0_i32_1 = arith.constant 0 : i32
    return %c0_i32, %c0_i32_0 : i32, i32
  }
  func.func @transform_2(%arg0: i32) -> (i32, i32) {
    %c0_i32 = arith.constant 0 : i32
    %c0_i32_0 = arith.constant 0 : i32
    %c0_i32_1 = arith.constant 0 : i32
    return %c0_i32, %c0_i32_0 : i32, i32
  }
  func.func @transform_3(%arg0: i32) -> (i32, i32, i32) {
    %c0_i32 = arith.constant 0 : i32
    %c0_i32_0 = arith.constant 0 : i32
    %c0_i32_1 = arith.constant 0 : i32
    return %arg0, %c0_i32, %c0_i32_0 : i32, i32, i32
  }
  func.func @transform_4(%arg0: i32) -> (i32, i32, i32) {
    %c0_i32 = arith.constant 0 : i32
    %c0_i32_0 = arith.constant 0 : i32
    %c0_i32_1 = arith.constant 0 : i32
    return %arg0, %c0_i32, %c0_i32_0 : i32, i32, i32
  }
  func.func @transform_5(%arg0: i32) -> (i32, i32, i32) {
    %c0_i32 = arith.constant 0 : i32
    %c0_i32_0 = arith.constant 0 : i32
    %c0_i32_1 = arith.constant 0 : i32
    return %arg0, %c0_i32, %c0_i32_0 : i32, i32, i32
  }
}

module attributes {stable_mosaic.version = 11 : i64} {
  func.func @_attention_kernel(%arg0: i32, %arg1: memref<2x8x64xbf16, #tpu.memory_space<vmem>>, %arg2: memref<2x64x16xbf16, #tpu.memory_space<vmem>>, %arg3: memref<2x16x64xbf16, #tpu.memory_space<vmem>>, %arg4: memref<2x8x64xf32, #tpu.memory_space<vmem>>) attributes {dimension_semantics = [#tpu.dimension_semantics<parallel>], iteration_bounds = array<i64: 2>, scalar_prefetch = 0 : i64, scratch_operands = 0 : i64, tpu.core_type = #tpu.core_type<tc>, window_params = [{transform_indices = @transform_0, window_bounds = array<i64: 2, 8, 64>}, {pipeline_mode = #tpu.pipeline_mode<synchronous>, transform_indices = @transform_1, window_bounds = array<i64: 2, 64, 16>}, {pipeline_mode = #tpu.pipeline_mode<synchronous>, transform_indices = @transform_2, window_bounds = array<i64: 2, 16, 64>}, {transform_indices = @transform_3, window_bounds = array<i64: 2, 8, 64>}]} {
    %c0 = arith.constant 0 : index
    %c0_0 = arith.constant 0 : index
    %c0_1 = arith.constant 0 : index
    %0 = vector.load %arg1[%c0, %c0_0, %c0_1] : memref<2x8x64xbf16, #tpu.memory_space<vmem>>, vector<2x8x64xbf16>
    %c0_2 = arith.constant 0 : index
    %c0_3 = arith.constant 0 : index
    %c0_4 = arith.constant 0 : index
    %1 = vector.load %arg2[%c0_2, %c0_3, %c0_4] : memref<2x64x16xbf16, #tpu.memory_space<vmem>>, vector<2x64x16xbf16>
    "tpu.trace_start"() <{level = 10 : i32, message = "blc,bcm->blm"}> : () -> ()
    %cst = arith.constant dense<0.000000e+00> : vector<2x8x16xf32>
    %2 = tpu.matmul %0, %1, %cst {dimension_numbers = #tpu.dot_dimension_numbers<[2], [1], [1], [2], [0, 0, 0, 1, 1, 2], [0], [0]>} : vector<2x8x64xbf16>, vector<2x64x16xbf16>, vector<2x8x16xf32> -> vector<2x8x16xf32>
    "tpu.trace_stop"() : () -> ()
    %cst_5 = arith.constant 1.250000e-01 : f32
    %3 = vector.broadcast %cst_5 : f32 to vector<2x8x16xf32>
    %4 = arith.mulf %2, %3 : vector<2x8x16xf32>
    %cst_6 = arith.constant dense<0xFF800000> : vector<8x16xf32>
    %5 = vector.multi_reduction <maximumf>, %4, %cst_6 [0] : vector<2x8x16xf32> to vector<8x16xf32>
    %6 = vector.shape_cast %5 : vector<8x16xf32> to vector<1x8x16xf32>
    %7 = vector.broadcast %6 : vector<1x8x16xf32> to vector<2x8x16xf32>
    %8 = arith.subf %4, %7 : vector<2x8x16xf32>
    %9 = math.exp %8 : vector<2x8x16xf32>
    %cst_7 = arith.constant dense<0.000000e+00> : vector<8x16xf32>
    %10 = vector.multi_reduction <add>, %9, %cst_7 [0] : vector<2x8x16xf32> to vector<8x16xf32>
    %11 = vector.shape_cast %10 : vector<8x16xf32> to vector<1x8x16xf32>
    %12 = vector.broadcast %11 : vector<1x8x16xf32> to vector<2x8x16xf32>
    %13 = arith.divf %9, %12 : vector<2x8x16xf32>
    %14 = arith.truncf %13 : vector<2x8x16xf32> to vector<2x8x16xbf16>
    %c0_8 = arith.constant 0 : index
    %c0_9 = arith.constant 0 : index
    %c0_10 = arith.constant 0 : index
    %15 = vector.load %arg3[%c0_8, %c0_9, %c0_10] : memref<2x16x64xbf16, #tpu.memory_space<vmem>>, vector<2x16x64xbf16>
    "tpu.trace_start"() <{level = 10 : i32, message = "blm,bmc->blc"}> : () -> ()
    %cst_11 = arith.constant dense<0.000000e+00> : vector<2x8x64xf32>
    %16 = tpu.matmul %14, %15, %cst_11 {dimension_numbers = #tpu.dot_dimension_numbers<[2], [1], [1], [2], [0, 0, 0, 1, 1, 2], [0], [0]>} : vector<2x8x16xbf16>, vector<2x16x64xbf16>, vector<2x8x64xf32> -> vector<2x8x64xf32>
    "tpu.trace_stop"() : () -> ()
    %c0_12 = arith.constant 0 : index
    %c0_13 = arith.constant 0 : index
    %c0_14 = arith.constant 0 : index
    %17 = vector.load %arg4[%c0_12, %c0_13, %c0_14] : memref<2x8x64xf32, #tpu.memory_space<vmem>>, vector<2x8x64xf32>
    tpu.vector_store %arg4[%c0_12, %c0_13, %c0_14], %16 {strides = array<i32>} : memref<2x8x64xf32, #tpu.memory_space<vmem>>, vector<2x8x64xf32>,
    return
  }
  func.func @transform_0(%arg0: i32) -> (i32, i32, i32) {
    %c0_i32 = arith.constant 0 : i32
    %c0_i32_0 = arith.constant 0 : i32
    %c0_i32_1 = arith.constant 0 : i32
    return %c0_i32, %arg0, %c0_i32_0 : i32, i32, i32
  }
  func.func @transform_1(%arg0: i32) -> (i32, i32, i32) {
    %c0_i32 = arith.constant 0 : i32
    %c0_i32_0 = arith.constant 0 : i32
    %c0_i32_1 = arith.constant 0 : i32
    %c0_i32_2 = arith.constant 0 : i32
    return %c0_i32, %c0_i32_0, %c0_i32_1 : i32, i32, i32
  }
  func.func @transform_2(%arg0: i32) -> (i32, i32, i32) {
    %c0_i32 = arith.constant 0 : i32
    %c0_i32_0 = arith.constant 0 : i32
    %c0_i32_1 = arith.constant 0 : i32
    %c0_i32_2 = arith.constant 0 : i32
    return %c0_i32, %c0_i32_0, %c0_i32_1 : i32, i32, i32
  }
  func.func @transform_3(%arg0: i32) -> (i32, i32, i32) {
    %c0_i32 = arith.constant 0 : i32
    %c0_i32_0 = arith.constant 0 : i32
    %c0_i32_1 = arith.constant 0 : i32
    return %c0_i32, %arg0, %c0_i32_0 : i32, i32, i32
  }
}

</mosaic_0001>

<bundles_post_ra>
// kernel: self_attention_forward.3
= control target key start
LH: loop header
LB: loop body
LE: loop exit
PB: predicated region body
PF: predicated region fallthrough
CT: control target
= control target key end

     0   :  { %s754_s12 = smov 0   ;;  %s756_s13 = smov 0   ;;  %s862_s0 = inlined_call_operand.vmem [shape: bf16[2,16,64], index: 0, kind: input, shape index: {}]   ;;  %s863_s1 = inlined_call_operand.vmem [shape: bf16[2,64,16], index: 1, kind: input, shape index: {}]   ;;  %s864_s2 = inlined_call_operand.vmem [shape: bf16[2,16,64], index: 2, kind: input, shape index: {}]   ;;  %s865_s3 = inlined_call_operand.vmem [shape: f32[2,16,64], index: 3, kind: output, shape index: {}]  }
   0x1   :  { %s758_s14 = smov 0  }
   0x2 LB: > { %s589_s15 = sadd.s32 4294967295, %s730_s14   ;;  %s771_s16 = sadd.s32 1, %s730_s14   ;;  %s730_s14 = sphi %s758_s14, %s869_s14   ;;  %s726_s13 = sphi %s756_s13, %s868_s13   ;;  %s722_s12 = sphi %s754_s12, %s867_s12  }
   0x3   : > { %s17_s17 = ssub.s32 %s730_s14, %s771_s16  ;;  %s20_s18 = sadd.s32 1, %s726_s13 }
   0x4   : > { %p18_p0 = scmp.eq.s32.totalorder %s17_s17, 0  ;;  %p27_p1 = scmp.ne.s32.totalorder %s726_s13, %s722_s12 }
   0x5   : > { %p28_p2 = scmp.eq.s32.totalorder %s730_s14, 0  ;;  %p99_p3 = scmp.eq.s32.totalorder %s589_s15, 1 }
   0x6   : > { %s782_s19 = scalar_select %p18_p0, %s726_s13, %s20_s18  }
   0x7   : > { %p29_p4 = por %p28_p2, %p27_p1  ;;  %p784_p5 = por %p99_p3, %p27_p1 }
   0x8   : > { %p592_p6 = scmp.ge.s32.totalorder %s730_s14, 2 }
   0xa   : > { %127 = sbr.rel (%p592_p6) target bundleno = 24 (0x18), region = 24 }
  0x11   : > { %130 = sbr.rel (!%p29_p4) target bundleno = 24 (0x18), region = 28  ;;  %s132_s21 = sand.u32 (%p29_p4), 1, %s726_s13  }
  0x12   : > { %s594_s22 = sshll.u32 (%p29_p4), %s730_s14, 2  ;;  %s593_s23 = sshll.u32 (%p29_p4), %s132_s21, 3 }
  0x13   : > { %s136_s26 = scalar_lea.vmem (%p29_p4), %s862_s0, %s594_s22  ;;  %s134_s27 = scalar_lea.vmem (%p29_p4), [#allocation2], %s593_s23 }
  0x14   : > { %v152_v0 = vld [vmem:[%s136_s26] sm:$0xf] (%p29_p4)  ;;  %v154_v1 = vld [vmem:[%s136_s26 + $0x8] sm:$0xf] (%p29_p4) }
  0x15   : > { %153 = vst [vmem:[%s134_s27] sm:$0xf] (%p29_p4), %v152_v0  ;;  %155 = vst [vmem:[%s134_s27 + $0x4] sm:$0xf] (%p29_p4), %v154_v1 }
  0x18 PF: > { %p595_p7 = scmp.ge.s32.totalorder %s730_s14, 1  ;;  %p181_p8 = scmp.lt.s32.totalorder %s730_s14, 3 }
  0x1a   : > { %p182_p9 = pnand %p595_p7, %p181_p8 }
  0x1b   : > { %v692_v2 = vld [vmem:[%s863_s1] sm:$0xff] (!%p182_p9)   ;;  %v732_v3 = vmov (!%p182_p9), 0.0   ;;  %v694_v5 = vld [vmem:[%s863_s1 + $0x8] sm:$0xff] (!%p182_p9)   ;;  %vm733_vm0 = vmmov (!%p182_p9), 0   ;;  %s188_s9 = sand.u32 (!%p182_p9), 1, %s722_s12   ;;  %v696_v7 = vld [vmem:[%s863_s1 + $0x10] sm:$0xff] (!%p182_p9)  }
  0x1c   : > { %185 = sbr.rel (%p182_p9) target bundleno = 517 (0x205), region = 69  ;;  %630 = vmatprep.subr.bf16.mxu0 (!%p182_p9), %v732_v3  ;;  %642 = vmatprep.subr.bf16.mxu1 (!%p182_p9), %v732_v3  ;;  %v693_v4 = vld [vmem:[%s863_s1 + $0x20] sm:$0xff] (!%p182_p9)   ;;  %v695_v6 = vld [vmem:[%s863_s1 + $0x28] sm:$0xff] (!%p182_p9)   ;;  %v697_v8 = vld [vmem:[%s863_s1 + $0x30] sm:$0xff] (!%p182_p9)   ;;  %s596_s21 = sshll.u32 (!%p182_p9), %s188_s9, 3  ;;  %vm253_vm1 = vcmask (!%p182_p9), 523264  }
  0x1d   : > { %631 = vmatpush3.bf16.msra.mxu0 (!%p182_p9), %v692_v2  ;;  %638 = vmatprep.mubr.msk.bf16.mxu0 (!%p182_p9), %vm733_vm0, %v732_v3  ;;  %v698_v9 = vld [vmem:[%s863_s1 + $0x18] sm:$0xff] (!%p182_p9)   ;;  %s190_s26 = scalar_lea.vmem (!%p182_p9), [#allocation2], %s596_s21  ;;  %v700_v13 = vld [vmem:[%s864_s2] sm:$0xff] (!%p182_p9)   ;;  %v701_v14 = vld [vmem:[%s864_s2 + $0x8] sm:$0xff] (!%p182_p9)   ;;  %vm366_vm2 = vcmask (!%p182_p9), 130048   ;;  %s597_s4 = sshll.u32 (!%p182_p9), %s188_s9, 4 }
  0x1e   : > { %643 = vmatpush3.bf16.msra.mxu1 (!%p182_p9), %v693_v4  ;;  %632 = vmatprep.subr.bf16.mxu0 (!%p182_p9), %v732_v3  ;;  %v699_v10 = vld [vmem:[%s863_s1 + $0x38] sm:$0xff] (!%p182_p9)   ;;  %v211_v11 = vld [vmem:[%s190_s26] sm:$0xf] (!%p182_p9)  ;;  %v212_v12 = vld [vmem:[%s190_s26 + $0x4] sm:$0xf] (!%p182_p9)  ;;  %s209_s5 = scalar_lea.vmem (!%p182_p9), [#allocation3], %s597_s4 }
  0x1f   : > { %644 = vmatprep.subr.bf16.mxu1 (!%p182_p9), %v732_v3  ;;  %650 = vmatprep.mubr.msk.bf16.mxu1 (!%p182_p9), %vm733_vm0, %v732_v3 }
  0x21   : > { %633 = vmatpush3.bf16.msra.mxu0 (!%p182_p9), %v694_v5 }
  0x22   : > { %645 = vmatpush3.bf16.msra.mxu1 (!%p182_p9), %v695_v6  ;;  %634 = vmatprep.subr.bf16.mxu0 (!%p182_p9), %v732_v3 }
  0x23   : > { %646 = vmatprep.subr.bf16.mxu1 %v732_v3  ;;  %s613_s12 = sshll.u32 (%p784_p5), %s589_s15, 3 }
  0x24   : > { %s496_s8 = scalar_lea.vmem (%p784_p5), %s865_s3, %s613_s12 }
  0x25   : > { %635 = vmatpush3.bf16.msra.mxu0 %v696_v7 }
  0x26   : > { %647 = vmatpush3.bf16.msra.mxu1 %v697_v8  ;;  %636 = vmatprep.subr.bf16.mxu0 %v732_v3 }
  0x27   : > { %648 = vmatprep.subr.bf16.mxu1 %v732_v3 }
  0x29   : > { %637 = vmatpush3.bf16.msra.mxu0 %v698_v9 }
  0x2a   : > { %649 = vmatpush3.bf16.msra.mxu1 %v699_v10  ;;  %654 = vmatprep.subr.bf16.mxu0 %v732_v3 }
  0x2b   : > { %660 = vmatprep.subr.bf16.mxu1 %v732_v3 }
  0x2c   : > { %639 = vmatmul.mubr.msk.bf16.vlgmr.msra.gmra.mrb[0].mxu0 %vm253_vm1, %v211_v11 }
  0x2d   : > { %651 = vmatmul.mubr.msk.bf16.vlgmr.msra.gmra.mrb[0].mxu1 %vm253_vm1, %v212_v12  ;;  %656 = vmatprep.mubr.msk.bf16.mxu0 %vm733_vm0, %v732_v3 }
  0x2e   : > { %662 = vmatprep.mubr.msk.bf16.mxu1 %vm733_vm0, %v732_v3  ;;  %655 = vmatpush3.bf16.msra.mxu0 %v700_v13 }
  0x2f   : > { %661 = vmatpush3.bf16.msra.mxu1 %v701_v14 }
  0xff   : > { %v291_v15 = vpop.f32.mrb[0].mxu0 }
 0x100   : > { %v364_v16 = vmul.f32 0.125, %v291_v15  ;;  %v358_v17 = vpop.f32.mrb[0].mxu1  ;;  %v640_v18 = vpop.f32.mrb[1].mxu0 }
 0x101   : > { %v365_v19 = vmul.f32 0.125, %v358_v17  ;;  %v652_v20 = vpop.f32.mrb[1].mxu1  ;;  %v294_v21 = vpop.f32.mrb[2].mxu0 }
 0x102   : > { %v367_v22 = vsel %vm366_vm2, %v364_v16, -inf  ;;  %v361_v23 = vpop.f32.mrb[2].mxu1  ;;  %v641_v24 = vpop.f32.mrb[3].mxu0 }
 0x103   : > { %v368_v25 = vsel %vm366_vm2, %v365_v19, -inf  ;;  %v653_v26 = vpop.f32.mrb[3].mxu1 }
 0x104   : > { %v369_v27 = vmax.f32 %v367_v22, %v368_v25 }
 0x106   : > { %v370_v28 = vsub.f32 %v364_v16, %v369_v27  ;;  %v371_v29 = vsub.f32 %v365_v19, %v369_v27 }
 0x108   : > { %v372_v30 = vmul.f32 1.442695, %v370_v28  ;;  %v374_v31 = vmul.f32 1.442695, %v371_v29 }
 0x10a   : > { %702 = vpow2.f32 %v372_v30 }
 0x10b   : > { %704 = vpow2.f32 %v374_v31 }
 0x114   : > { %v703_v32 = vpop.eup %702 }
 0x115   : > { %v705_v33 = vpop.eup %704  ;;  %v376_v34 = vsel %vm366_vm2, %v703_v32, 0.0 }
 0x116   : > { %v377_v35 = vsel %vm366_vm2, %v705_v33, 0.0 }
 0x117   : > { %v378_v36 = vadd.f32 %v377_v35, %v376_v34 }
 0x119   : > { %706 = vrcp.f32 %v378_v36 }
 0x123   : > { %v707_v37 = vpop.eup %706 }
 0x124   : > { %v380_v38 = vmul.f32 %v707_v37, %v703_v32  ;;  %v381_v39 = vmul.f32 %v707_v37, %v705_v33 }
 0x126   : > { %v382_v40 = vpack.c.bf16 %v380_v38, %v380_v38  ;;  %v383_v41 = vpack.c.bf16 %v381_v39, %v381_v39 }
 0x128   : > { %657 = vmatmul.mubr.msk.bf16.vlgmr.msra.gmra.mrb[4].mxu0 %vm366_vm2, %v382_v40  ;;  %663 = vmatmul.mubr.msk.bf16.vlgmr.msra.gmra.mrb[4].mxu1 %vm366_vm2, %v383_v41 }
 0x1f8   : > { %494 = sbr.rel (!%p784_p5) target bundleno = 517 (0x205), region = 77 }
 0x1fb   : > { %v431_v42 = vpop.f32.mrb[4].mxu0  ;;  %v480_v43 = vpop.f32.mrb[4].mxu1 }
 0x1fc   : > { %486 = vst.msk [vmem:[%s209_s5] sm:$0xff] %vm253_vm1, %v431_v42  ;;  %487 = vst.msk [vmem:[%s209_s5 + $0x8] sm:$0xff] %vm253_vm1, %v480_v43  ;;  %v658_v44 = vpop.f32.mrb[5].mxu0  ;;  %v664_v45 = vpop.f32.mrb[5].mxu1 }
 0x1fd   : > { %v434_v46 = vpop.f32.mrb[6].mxu0  ;;  %v483_v47 = vpop.f32.mrb[6].mxu1 }
 0x1fe   : > { %v659_v48 = vpop.f32.mrb[7].mxu0  ;;  %v665_v49 = vpop.f32.mrb[7].mxu1 }
 0x203   : > { %v526_v50 = vld [vmem:[%s209_s5] sm:$0xff]  ;;  %v528_v51 = vld [vmem:[%s209_s5 + $0x8] sm:$0xff] }
 0x204   : > { %527 = vst [vmem:[%s496_s8] sm:$0xff] %v526_v50  ;;  %529 = vst [vmem:[%s496_s8 + $0x10] sm:$0xff] %v528_v51 }
 0x205 PF: > { %p10_p10 = scmp.ge.s32.totalorder %s771_s16, 4   ;;  %s867_s12 = smov %s726_s13 }
 0x206   : > { %s868_s13 = smov %s782_s19  ;;  %s869_s14 = smov %s771_s16 }
 0x207   :  { %12 = sbr.rel (!%p10_p10) target bundleno = 2 (0x2), region = 146 }

// kernel: self_attention_forward.2
= control target key start
LH: loop header
LB: loop body
LE: loop exit
PB: predicated region body
PF: predicated region fallthrough
CT: control target
= control target key end

     0   :  { %s1136_s18 = smov 0   ;;  %s1357_s0 = inlined_call_operand.vmem [shape: bf16[2,64,16], index: 0, kind: input, shape index: {}]   ;;  %s1358_s1 = inlined_call_operand.vmem [shape: bf16[192,64], index: 1, kind: input, shape index: {}]   ;;  %s1359_s2 = inlined_call_operand.vmem [shape: f32[192,1], index: 2, kind: input, shape index: {}]   ;;  %s1360_s3 = inlined_call_operand.vmem [shape: bf16[2,64,16], index: 3, kind: output, shape index: {0}]   ;;  %s1361_s4 = inlined_call_operand.vmem [shape: bf16[2,64,16], index: 4, kind: output, shape index: {1}]   ;;  %s1362_s5 = inlined_call_operand.vmem [shape: bf16[2,64,16], index: 5, kind: output, shape index: {2}]  }
   0x1 LB: > { %s919_s19 = sadd.s32 4294967295, %s1103_s18   ;;  %p923_p0 = scmp.ge.s32.totalorder %s1103_s18, 1  ;;  %s1103_s18 = sphi %s1136_s18, %s16_s18  }
   0x2   : > { %p192_p1 = scmp.lt.s32.totalorder %s1103_s18, 3 }
   0x4   : > { %p193_p2 = pnand %p923_p0, %p192_p1 }
   0x5   : > { %p230_p3 = scmp.lt.s32.totalorder (!%p193_p2), %s919_s19, 1  ;;  %v1085_v0 = vld [vmem:[%s1358_s1] sm:$0xff] (!%p193_p2)   ;;  %vm511_vm0 = vcmask (!%p193_p2), 523264   ;;  %v1086_v1 = vld [vmem:[%s1358_s1 + $0x30] sm:$0xff] (!%p193_p2)   ;;  %v1105_v2 = vmov (!%p193_p2), 0   ;;  %v286_v9 = vld [vmem:[%s1359_s2 + $0x18] sm:$0xff] (!%p193_p2) }
   0x6   : > { %196 = sbr.rel (%p193_p2) target bundleno = 269 (0x10d), region = 32  ;;  %1038 = vmatprep.mubr.msk.bf16.mxu0 (!%p193_p2), %vm511_vm0, %v1085_v0  ;;  %1050 = vmatprep.mubr.msk.bf16.mxu1 (!%p193_p2), %vm511_vm0, %v1086_v1  ;;  %v285_v6 = vld [vmem:[%s1359_s2 + $0x10] sm:$0xff] (!%p193_p2)  ;;  %v283_v7 = vld [vmem:[%s1359_s2] sm:$0xff] (!%p193_p2)  ;;  %v284_v10 = vld [vmem:[%s1359_s2 + $0x8] sm:$0xff] (!%p193_p2)  ;;  %vm709_vm1 = vcmask (!%p193_p2), 125952  }
   0x7   : > { %1080 = vset.pattern.permute.xlu1 (!%p193_p2), %v1105_v2  ;;  %1079 = vset.pattern.permute.xlu0 (!%p193_p2), %v1105_v2  ;;  %v1087_v11 = vld [vmem:[%s1358_s1 + $0x8] sm:$0xff] (!%p193_p2)   ;;  %v1088_v12 = vld [vmem:[%s1358_s1 + $0x38] sm:$0xff] (!%p193_p2)   ;;  %v287_v14 = vld [vmem:[%s1359_s2 + $0x20] sm:$0xff] (!%p193_p2) }
   0x8   : > { %319 = vperm.xlu1 (!%p193_p2), %1080, %v285_v6   ;;  %309 = vperm.xlu0 (!%p193_p2), %1079, %v283_v7   ;;  %v288_v13 = vld [vmem:[%s1359_s2 + $0x28] sm:$0xff] (!%p193_p2)  ;;  %v1089_v15 = vld [vmem:[%s1358_s1 + $0x10] sm:$0xff] (!%p193_p2)   ;;  %v1090_v16 = vld [vmem:[%s1358_s1 + $0x40] sm:$0xff] (!%p193_p2)  }
   0x9   : > { %v290_v17 = vld [vmem:[%s1359_s2 + $0x38] sm:$0xff] (!%p193_p2)  ;;  %v289_v18 = vld [vmem:[%s1359_s2 + $0x30] sm:$0xff] (!%p193_p2)  ;;  %v1092_v20 = vld [vmem:[%s1358_s1 + $0x48] sm:$0xff] (!%p193_p2)  }
   0xa   : > { %v1091_v19 = vld [vmem:[%s1358_s1 + $0x18] sm:$0xff] (!%p193_p2)   ;;  %v292_v21 = vld [vmem:[%s1359_s2 + $0x48] sm:$0xff] (!%p193_p2)  ;;  %v291_v22 = vld [vmem:[%s1359_s2 + $0x40] sm:$0xff] (!%p193_p2) }
   0xb   : > { %v1093_v23 = vld [vmem:[%s1358_s1 + $0x20] sm:$0xff] (!%p193_p2)   ;;  %v1094_v24 = vld [vmem:[%s1358_s1 + $0x50] sm:$0xff] (!%p193_p2)   ;;  %v294_v25 = vld [vmem:[%s1359_s2 + $0x58] sm:$0xff] (!%p193_p2) }
   0xc   : > { %324 = vperm.xlu1 (!%p193_p2), %1080, %v286_v9   ;;  %314 = vperm.xlu0 (!%p193_p2), %1079, %v284_v10   ;;  %v293_v26 = vld [vmem:[%s1359_s2 + $0x50] sm:$0xff] (!%p193_p2)  ;;  %v1095_v27 = vld [vmem:[%s1358_s1 + $0x28] sm:$0xff] (!%p193_p2)   ;;  %v1096_v28 = vld [vmem:[%s1358_s1 + $0x58] sm:$0xff] (!%p193_p2)  }
   0xd   : > { %s1364_s19 = smov (!%p230_p3, %s919_s19), 1  ;;  %v296_v29 = vld [vmem:[%s1359_s2 + $0x68] sm:$0xff]  ;;  %v295_v30 = vld [vmem:[%s1359_s2 + $0x60] sm:$0xff]  ;;  %v298_v31 = vld [vmem:[%s1359_s2 + $0x78] sm:$0xff] }
   0xe   : > { %s1152_s24 = sshll.u32 %s1364_s19, 5  ;;  %v297_v32 = vld [vmem:[%s1359_s2 + $0x70] sm:$0xff]  ;;  %v300_v33 = vld [vmem:[%s1359_s2 + $0x88] sm:$0xff]  ;;  %v299_v34 = vld [vmem:[%s1359_s2 + $0x80] sm:$0xff] }
   0xf   : > { %s234_s27 = scalar_lea.vmem %s1357_s0, %s1152_s24  ;;  %v302_v35 = vld [vmem:[%s1359_s2 + $0x98] sm:$0xff]  ;;  %v301_v36 = vld [vmem:[%s1359_s2 + $0x90] sm:$0xff]  ;;  %v304_v37 = vld [vmem:[%s1359_s2 + $0xa8] sm:$0xff]  ;;  %s1286_s29 = scalar_lea.vmem %s1360_s3, %s1152_s24 }
  0x10   : > { %v1081_v3 = vld [vmem:[%s234_s27] sm:$0xff]   ;;  %v1082_v4 = vld [vmem:[%s234_s27 + $0x8] sm:$0xff]   ;;  %v1083_v5 = vld [vmem:[%s234_s27 + $0x10] sm:$0xff]   ;;  %334 = vperm.xlu1 %1080, %v288_v13   ;;  %329 = vperm.xlu0 %1079, %v287_v14   ;;  %s1292_s7 = scalar_lea.vmem %s1361_s4, %s1152_s24  ;;  %s1314_s10 = scalar_lea.vmem %s1362_s5, %s1152_s24 }
  0x11   : > { %1030 = vmatprep.subr.bf16.mxu0 %v1081_v3  ;;  %1062 = vmatprep.subr.bf16.mxu1 %v1081_v3  ;;  %v1084_v8 = vld [vmem:[%s234_s27 + $0x18] sm:$0xff]   ;;  %v303_v38 = vld [vmem:[%s1359_s2 + $0xa0] sm:$0xff]  ;;  %v305_v40 = vld [vmem:[%s1359_s2 + $0xb0] sm:$0xff] }
  0x12   : > { %1031 = vmatpush3.bf16.msra.mxu0 %v1081_v3  ;;  %1066 = vmatpush3.bf16.msra.mxu1 %v1081_v3  ;;  %v306_v39 = vld [vmem:[%s1359_s2 + $0xb8] sm:$0xff] }
  0x13   : > { %1032 = vmatprep.subr.bf16.mxu0 %v1082_v4  ;;  %1063 = vmatprep.subr.bf16.mxu1 %v1082_v4 }
  0x14   : > { %344 = vperm.xlu1 %1080, %v290_v17   ;;  %339 = vperm.xlu0 %1079, %v289_v18  }
  0x16   : > { %1033 = vmatpush3.bf16.msra.mxu0 %v1082_v4  ;;  %1067 = vmatpush3.bf16.msra.mxu1 %v1082_v4 }
  0x17   : > { %1034 = vmatprep.subr.bf16.mxu0 %v1083_v5  ;;  %1064 = vmatprep.subr.bf16.mxu1 %v1083_v5 }
  0x18   : > { %354 = vperm.xlu1 %1080, %v292_v21   ;;  %349 = vperm.xlu0 %1079, %v291_v22  }
  0x1a   : > { %1035 = vmatpush3.bf16.msra.mxu0 %v1083_v5  ;;  %1068 = vmatpush3.bf16.msra.mxu1 %v1083_v5 }
  0x1b   : > { %1036 = vmatprep.subr.bf16.mxu0 %v1084_v8  ;;  %1065 = vmatprep.subr.bf16.mxu1 %v1084_v8 }
  0x1c   : > { %364 = vperm.xlu1 %1080, %v294_v25   ;;  %359 = vperm.xlu0 %1079, %v293_v26  }
  0x1e   : > { %1037 = vmatpush3.bf16.msra.mxu0 %v1084_v8  ;;  %1069 = vmatpush3.bf16.msra.mxu1 %v1084_v8 }
  0x20   : > { %374 = vperm.xlu1 %1080, %v296_v29   ;;  %369 = vperm.xlu0 %1079, %v295_v30  }
  0x21   : > { %1039 = vmatmul.mubr.msk.bf16.vlgmr.msra.gmra.mrb[0].mxu0 %vm511_vm0, %v1087_v11  ;;  %1051 = vmatmul.mubr.msk.bf16.vlgmr.msra.gmra.mrb[0].mxu1 %vm511_vm0, %v1088_v12 }
  0x22   : > { %1042 = vmatprep.mubr.msk.bf16.mxu0 %vm511_vm0, %v1089_v15  ;;  %1054 = vmatprep.mubr.msk.bf16.mxu1 %vm511_vm0, %v1090_v16 }
  0x24   : > { %384 = vperm.xlu1 %1080, %v298_v31   ;;  %379 = vperm.xlu0 %1079, %v297_v32  }
  0x28   : > { %394 = vperm.xlu1 %1080, %v300_v33   ;;  %389 = vperm.xlu0 %1079, %v299_v34  }
  0x29   : > { %1043 = vmatmul.mubr.msk.bf16.gmra.mrb[4].mxu0 %vm511_vm0, %v1091_v19  ;;  %1055 = vmatmul.mubr.msk.bf16.gmra.mrb[4].mxu1 %vm511_vm0, %v1092_v20 }
  0x2a   : > { %1046 = vmatprep.mubr.msk.bf16.mxu0 %vm511_vm0, %v1093_v23  ;;  %1058 = vmatprep.mubr.msk.bf16.mxu1 %vm511_vm0, %v1094_v24 }
  0x2c   : > { %404 = vperm.xlu1 %1080, %v302_v35   ;;  %399 = vperm.xlu0 %1079, %v301_v36  }
  0x30   : > { %414 = vperm.xlu1 %1080, %v304_v37   ;;  %409 = vperm.xlu0 %1079, %v303_v38  }
  0x31   : > { %1047 = vmatmul.mubr.msk.bf16.gmra.mrb[8].mxu0 %vm511_vm0, %v1095_v27  ;;  %1059 = vmatmul.mubr.msk.bf16.gmra.mrb[8].mxu1 %vm511_vm0, %v1096_v28 }
  0x34   : > { %424 = vperm.xlu1 %1080, %v306_v39   ;;  %419 = vperm.xlu0 %1079, %v305_v40  }
  0x87   : > { %v320_v41 = vpop.permute.xlu1 %319  ;;  %v310_v42 = vpop.permute.xlu0 %309 }
  0x8b   : > { %v325_v43 = vpop.permute.xlu1 %324  ;;  %v315_v44 = vpop.permute.xlu0 %314 }
  0x8f   : > { %v1270_v45 = vpop.permute.xlu1 %334  ;;  %v330_v46 = vpop.permute.xlu0 %329 }
  0x93   : > { %v1272_v47 = vpop.permute.xlu1 %344  ;;  %v340_v48 = vpop.permute.xlu0 %339 }
  0x97   : > { %v1274_v49 = vpop.permute.xlu1 %354  ;;  %v1276_v50 = vpop.permute.xlu0 %349 }
  0x9b   : > { %v1278_v51 = vpop.permute.xlu1 %364  ;;  %v1280_v52 = vpop.permute.xlu0 %359 }
  0x9f   : > { %v375_v53 = vpop.permute.xlu1 %374  ;;  %v370_v54 = vpop.permute.xlu0 %369 }
  0xa3   : > { %v385_v55 = vpop.permute.xlu1 %384  ;;  %v380_v56 = vpop.permute.xlu0 %379 }
  0xa7   : > { %v395_v57 = vpop.permute.xlu1 %394  ;;  %v390_v58 = vpop.permute.xlu0 %389 }
  0xab   : > { %v405_v59 = vpop.permute.xlu1 %404  ;;  %v400_v60 = vpop.permute.xlu0 %399 }
  0xaf   : > { %v415_v21 = vpop.permute.xlu1 %414  ;;  %v410_v22 = vpop.permute.xlu0 %409 }
  0xf4   : > { %v1040_v61 = vpop.f32.mrb[0].mxu0  ;;  %v1052_v62 = vpop.f32.mrb[0].mxu1 }
  0xf5   : > { %v591_v63 = vadd.f32 %v1040_v61, %v320_v41  ;;  %v639_v0 = vadd.f32 %v1052_v62, %v380_v56  ;;  %v582_v1 = vpop.f32.mrb[1].mxu0  ;;  %v630_v2 = vpop.f32.mrb[1].mxu1 }
  0xf6   : > { %v583_v3 = vadd.f32 %v582_v1, %v310_v42  ;;  %v631_v4 = vadd.f32 %v630_v2, %v370_v54  ;;  %v1041_v5 = vpop.f32.mrb[2].mxu0  ;;  %v1053_v6 = vpop.f32.mrb[2].mxu1 }
  0xf7   : > { %v992_v7 = vpack.c.bf16 %v591_v63, %v591_v63  ;;  %v1004_v8 = vpack.c.bf16 %v639_v0, %v639_v0  ;;  %v594_v9 = vadd.f32 %v1041_v5, %v325_v43  ;;  %v642_v10 = vadd.f32 %v1053_v6, %v385_v55  ;;  %v585_v11 = vpop.f32.mrb[3].mxu0  ;;  %v633_v12 = vpop.f32.mrb[3].mxu1 }
  0xf8   : > { %v990_v13 = vpack.c.bf16 %v583_v3, %v583_v3  ;;  %v1002_v14 = vpack.c.bf16 %v631_v4, %v631_v4  ;;  %v586_v15 = vadd.f32 %v585_v11, %v315_v44  ;;  %v634_v16 = vadd.f32 %v633_v12, %v375_v53  ;;  %v420_v53 = vpop.permute.xlu0 %419 }
  0xf9   : > { %712 = vst.msk [vmem:[%s1286_s29 + $0x8] sm:$0xf] %vm709_vm1, %v992_v7  ;;  %756 = vst.msk [vmem:[%s1292_s7 + $0x18] sm:$0xf] %vm709_vm1, %v1004_v8  ;;  %v993_v17 = vpack.c.bf16 %v594_v9, %v594_v9  ;;  %v1005_v18 = vpack.c.bf16 %v642_v10, %v642_v10 }
  0xfa   : > { %710 = vst.msk [vmem:[%s1286_s29] sm:$0xf] %vm709_vm1, %v990_v13  ;;  %754 = vst.msk [vmem:[%s1292_s7 + $0x10] sm:$0xf] %vm709_vm1, %v1002_v14  ;;  %v991_v19 = vpack.c.bf16 %v586_v15, %v586_v15  ;;  %v1003_v20 = vpack.c.bf16 %v634_v16, %v634_v16 }
  0xfb   : > { %713 = vst.msk [vmem:[%s1286_s29 + $0xc] sm:$0xf] %vm709_vm1, %v993_v17  ;;  %757 = vst.msk [vmem:[%s1292_s7 + $0x1c] sm:$0xf] %vm709_vm1, %v1005_v18 }
  0xfc   : > { %711 = vst.msk [vmem:[%s1286_s29 + $0x4] sm:$0xf] %vm709_vm1, %v991_v19  ;;  %755 = vst.msk [vmem:[%s1292_s7 + $0x14] sm:$0xf] %vm709_vm1, %v1003_v20  ;;  %v1044_v23 = vpop.f32.mrb[4].mxu0  ;;  %v1056_v24 = vpop.f32.mrb[4].mxu1 }
  0xfd   : > { %v607_v25 = vadd.f32 %v1044_v23, %v340_v48  ;;  %v655_v26 = vadd.f32 %v1056_v24, %v400_v60  ;;  %v598_v27 = vpop.f32.mrb[5].mxu0  ;;  %v646_v28 = vpop.f32.mrb[5].mxu1 }
  0xfe   : > { %v599_v29 = vadd.f32 %v598_v27, %v330_v46  ;;  %v647_v30 = vadd.f32 %v646_v28, %v390_v58  ;;  %v1045_v31 = vpop.f32.mrb[6].mxu0  ;;  %v1057_v32 = vpop.f32.mrb[6].mxu1 }
  0xff   : > { %v996_v33 = vpack.c.bf16 %v607_v25, %v607_v25  ;;  %v1008_v34 = vpack.c.bf16 %v655_v26, %v655_v26  ;;  %v610_v35 = vadd.f32 %v1045_v31, %v1272_v47  ;;  %v658_v36 = vadd.f32 %v1057_v32, %v405_v59  ;;  %v601_v37 = vpop.f32.mrb[7].mxu0  ;;  %v649_v38 = vpop.f32.mrb[7].mxu1 }
 0x100   : > { %v994_v39 = vpack.c.bf16 %v599_v29, %v599_v29  ;;  %v1006_v40 = vpack.c.bf16 %v647_v30, %v647_v30  ;;  %v602_v41 = vadd.f32 %v601_v37, %v1270_v45  ;;  %v650_v42 = vadd.f32 %v649_v38, %v395_v57  ;;  %v425_v48 = vpop.permute.xlu1 %424 }
 0x101   : > { %716 = vst.msk [vmem:[%s1286_s29 + $0x18] sm:$0xf] %vm709_vm1, %v996_v33  ;;  %792 = vst.msk [vmem:[%s1314_s10 + $0x8] sm:$0xf] %vm709_vm1, %v1008_v34  ;;  %v997_v43 = vpack.c.bf16 %v610_v35, %v610_v35  ;;  %v1009_v44 = vpack.c.bf16 %v658_v36, %v658_v36 }
 0x102   : > { %714 = vst.msk [vmem:[%s1286_s29 + $0x10] sm:$0xf] %vm709_vm1, %v994_v39  ;;  %790 = vst.msk [vmem:[%s1314_s10] sm:$0xf] %vm709_vm1, %v1006_v40  ;;  %v995_v46 = vpack.c.bf16 %v602_v41, %v602_v41  ;;  %v1007_v47 = vpack.c.bf16 %v650_v42, %v650_v42 }
 0x103   : > { %717 = vst.msk [vmem:[%s1286_s29 + $0x1c] sm:$0xf] %vm709_vm1, %v997_v43  ;;  %793 = vst.msk [vmem:[%s1314_s10 + $0xc] sm:$0xf] %vm709_vm1, %v1009_v44 }
 0x104   : > { %715 = vst.msk [vmem:[%s1286_s29 + $0x14] sm:$0xf] %vm709_vm1, %v995_v46  ;;  %791 = vst.msk [vmem:[%s1314_s10 + $0x4] sm:$0xf] %vm709_vm1, %v1007_v47  ;;  %v1048_v45 = vpop.f32.mrb[8].mxu0  ;;  %v1060_v54 = vpop.f32.mrb[8].mxu1 }
 0x105   : > { %v623_v55 = vadd.f32 %v1048_v45, %v1280_v52  ;;  %v671_v56 = vadd.f32 %v1060_v54, %v420_v53  ;;  %v614_v57 = vpop.f32.mrb[9].mxu0  ;;  %v662_v58 = vpop.f32.mrb[9].mxu1 }
 0x106   : > { %v615_v59 = vadd.f32 %v614_v57, %v1276_v50  ;;  %v663_v60 = vadd.f32 %v662_v58, %v410_v22  ;;  %v1049_v61 = vpop.f32.mrb[10].mxu0  ;;  %v1061_v62 = vpop.f32.mrb[10].mxu1 }
 0x107   : > { %v1000_v63 = vpack.c.bf16 %v623_v55, %v623_v55  ;;  %v1012_v0 = vpack.c.bf16 %v671_v56, %v671_v56  ;;  %v626_v1 = vadd.f32 %v1049_v61, %v1278_v51  ;;  %v674_v2 = vadd.f32 %v1061_v62, %v425_v48  ;;  %v617_v52 = vpop.f32.mrb[11].mxu0  ;;  %v665_v3 = vpop.f32.mrb[11].mxu1 }
 0x108   : > { %v998_v4 = vpack.c.bf16 %v615_v59, %v615_v59  ;;  %v1010_v5 = vpack.c.bf16 %v663_v60, %v663_v60  ;;  %v618_v50 = vadd.f32 %v617_v52, %v1274_v49  ;;  %v666_v6 = vadd.f32 %v665_v3, %v415_v21 }
 0x109   : > { %752 = vst.msk [vmem:[%s1292_s7 + $0x8] sm:$0xf] %vm709_vm1, %v1000_v63  ;;  %796 = vst.msk [vmem:[%s1314_s10 + $0x18] sm:$0xf] %vm709_vm1, %v1012_v0  ;;  %v1001_v7 = vpack.c.bf16 %v626_v1, %v626_v1  ;;  %v1013_v8 = vpack.c.bf16 %v674_v2, %v674_v2 }
 0x10a   : > { %750 = vst.msk [vmem:[%s1292_s7] sm:$0xf] %vm709_vm1, %v998_v4  ;;  %794 = vst.msk [vmem:[%s1314_s10 + $0x10] sm:$0xf] %vm709_vm1, %v1010_v5  ;;  %v999_v51 = vpack.c.bf16 %v618_v50, %v618_v50  ;;  %v1011_v9 = vpack.c.bf16 %v666_v6, %v666_v6 }
 0x10b   : > { %753 = vst.msk [vmem:[%s1292_s7 + $0xc] sm:$0xf] %vm709_vm1, %v1001_v7  ;;  %797 = vst.msk [vmem:[%s1314_s10 + $0x1c] sm:$0xf] %vm709_vm1, %v1013_v8 }
 0x10c   : > { %751 = vst.msk [vmem:[%s1292_s7 + $0x4] sm:$0xf] %vm709_vm1, %v999_v51  ;;  %795 = vst.msk [vmem:[%s1314_s10 + $0x14] sm:$0xf] %vm709_vm1, %v1011_v9 }
 0x10d PF: > { %s16_s18 = sadd.s32 1, %s1103_s18  }
 0x10e   : > { %p13_p4 = scmp.ge.s32.totalorder %s16_s18, 4  }
 0x110   :  { %15 = sbr.rel (!%p13_p4) target bundleno = 1 (0x1), region = 86 }

</bundles_post_ra>
